<compile_context>
chip_gen: v7x
topology: tpu7x:2x2x1
jax: 0.10.0
libtpu: 0.0.40
codegen_flags: <defaults>
</compile_context>

<pallas_src>
import jax
import jax.numpy as jnp
from jax.experimental import pallas as pl
from jax.experimental.pallas import tpu as pltpu


def deepsets_kernel(x_ref, wa_ref, wb_ref, bias_ref, o_ref):
    x = x_ref[...]                                   # (TL, S, D) f32
    TL, S, D = x.shape
    H = 4 * D

    # --- static slices of the packed parameter slabs (no data movement) ---
    w1 = wa_ref[0:D, :]                              # (D, 4D)  bf16
    w3a = wa_ref[D:2 * D, :]                         # (D, 4D)  bf16
    w3b = wa_ref[2 * D:3 * D, :]                     # (D, 4D)  bf16
    w2 = wb_ref[0:H, :]                              # (4D, D)  bf16
    w4 = wb_ref[H:2 * H, :]                          # (4D, D)  bf16
    b1 = bias_ref[0:1, :]                            # (1, 4D)  f32
    b3 = bias_ref[1:2, :]                            # (1, 4D)  f32
    b2 = bias_ref[2:3, 0:D]                          # (1, D)   f32
    b4 = bias_ref[3:4, 0:D]                          # (1, D)   f32

    # --- leave-one-out masked max over the set axis ---
    #   cm[l, j, d] = max_i( x[l, i, d] * (1 - delta(i, j)) )
    #               = max( max_{i != j} x[l, i, d], 0 )
    # Top-2 + tie-count: row j only loses the column max m1 when it is the unique
    # maximiser; the masked (zeroed) diagonal entry contributes 0 to the max.
    neg_inf = jnp.float32(-jnp.inf)
    m1 = jnp.max(x, axis=1, keepdims=True)                                 # (TL,1,D)
    is_max = x == m1                                                       # (TL,S,D)
    tie = jnp.sum(is_max.astype(jnp.float32), axis=1, keepdims=True)       # (TL,1,D)
    m2 = jnp.max(jnp.where(is_max, neg_inf, x), axis=1, keepdims=True)     # (TL,1,D)
    loo = jnp.where(is_max & (tie == 1.0), m2, m1)                         # (TL,S,D)
    cm = jnp.maximum(loo, 0.0)

    x2 = x.reshape(TL * S, D)
    cm2 = cm.reshape(TL * S, D)
    bf16 = jnp.bfloat16

    # gen1 -> relu -> gen2        (bf16 MXU operands, f32 accumulation)
    h1 = jnp.maximum(
        jnp.dot(cm2.astype(bf16), w1, preferred_element_type=jnp.float32) + b1, 0.0)
    h2 = jnp.dot(h1.astype(bf16), w2, preferred_element_type=jnp.float32) + b2

    # cat([x, h2], 1) @ W3  ==  x @ W3[:D] + h2 @ W3[D:]   (concat-free)
    h3 = jnp.maximum(
        jnp.dot(x2.astype(bf16), w3a, preferred_element_type=jnp.float32)
        + jnp.dot(h2.astype(bf16), w3b, preferred_element_type=jnp.float32)
        + b3, 0.0)
    h4 = jnp.dot(h3.astype(bf16), w4, preferred_element_type=jnp.float32) + b4

    # residual in f32
    o_ref[...] = (x2 + h4).reshape(TL, S, D).astype(o_ref.dtype)


def _choose_tl(L, S, D, target_rows=2048, max_block_bytes=4 << 20):
    """set_length tile size.  Policy (per perf review):
      * keep >= 2 grid steps whenever L >= 2 so the pipeliner overlaps DMA/compute,
      * prefer an even step count when L >= 4 (v7x megacore via "parallel"),
      * grow the tile until tl*S reaches target_rows (MXU M dim) or the f32 block
        exceeds max_block_bytes (keeps intermediates inside the 48 MiB VMEM budget).
    """
    if L <= 1:
        return 1
    max_tl = max(1, L // 2)
    candidates = [t for t in range(1, max_tl + 1)
                  if L % t == 0 and t * S * D * 4 <= max_block_bytes]
    if not candidates:
        return 1
    if L >= 4:
        even = [t for t in candidates if (L // t) % 2 == 0]
        if even:
            candidates = even
    for t in candidates:                     # smallest tile reaching target_rows
        if t * S >= target_rows:
            return t
    return candidates[-1]                    # else the largest tile available


def _vmem_limit_bytes(tl, S, D):
    """Explicit VMEM budget: 2x in-block + 2x out-block (f32), 2x packed weight
    slabs, f32 intermediates (cm, h1..h4) and their bf16 cast temporaries, plus
    25% + 4 MiB slack.  Floor 32 MiB (default scoped limit), cap 48 MiB (safe on
    v7x's 64 MiB physical VMEM)."""
    rows = tl * S
    block = rows * D * 4
    weights = (3 * D * 4 * D + 8 * D * D) * 2 + 4 * 4 * D * 4
    interm_f32 = rows * (3 * D + 2 * 4 * D) * 4      # cm, h2, h4 (D) + h1, h3 (4D)
    interm_bf16 = interm_f32 // 2                    # bf16 dot-operand temporaries
    total = 4 * block + 2 * weights + interm_f32 + interm_bf16
    total = int(total * 1.25) + (4 << 20)
    return int(max(32 << 20, min(total, 48 << 20)))


def deepsets_forward(set_input, params, tl=None):
    L, S, D = set_input.shape
    H = 4 * D
    w1, b1, w2, b2, w3, b3, w4, b4 = params
    bf16 = jnp.bfloat16
    f32 = jnp.float32

    # Pack parameters into 3 slabs (weights pre-cast to bf16, biases as f32 rows).
    wa = jnp.concatenate([w1, w3[:D], w3[D:]], axis=0).astype(bf16)   # (3D, 4D)
    wb = jnp.concatenate([w2, w4], axis=0).astype(bf16)               # (8D, D)
    pad = jnp.zeros((H - D,), f32)
    bias = jnp.stack([
        b1.astype(f32),
        b3.astype(f32),
        jnp.concatenate([b2.astype(f32), pad]),
        jnp.concatenate([b4.astype(f32), pad]),
    ], axis=0)                                                        # (4, 4D)

    if tl is None:
        tl = _choose_tl(L, S, D)
    assert L % tl == 0
    grid = (L // tl,)

    return pl.pallas_call(
        deepsets_kernel,
        out_shape=jax.ShapeDtypeStruct((L, S, D), set_input.dtype),
        grid=grid,
        in_specs=[
            pl.BlockSpec((tl, S, D), lambda l: (l, 0, 0)),
            pl.BlockSpec(wa.shape, lambda l: (0, 0)),
            pl.BlockSpec(wb.shape, lambda l: (0, 0)),
            pl.BlockSpec(bias.shape, lambda l: (0, 0)),
        ],
        out_specs=pl.BlockSpec((tl, S, D), lambda l: (l, 0, 0)),
        compiler_params=pltpu.CompilerParams(
            dimension_semantics=("parallel",),
            vmem_limit_bytes=_vmem_limit_bytes(tl, S, D),
        ),
    )(set_input, wa, wb, bias)


def ref_forward(x, params):
    """Pure-JAX f32 reference mirroring the PyTorch forward exactly."""
    L, S, D = x.shape
    w1, b1, w2, b2, w3, b3, w4, b4 = params
    mask = (1.0 - jnp.eye(S, dtype=x.dtype)).reshape(1, S, S, 1)
    cm = jnp.max(x[:, :, None, :] * mask, axis=1)          # (L, S, D)
    cm = cm.reshape(-1, D)
    h1 = jax.nn.relu(cm @ w1 + b1)
    h2 = h1 @ w2 + b2
    cat = jnp.concatenate([x.reshape(-1, D), h2], axis=1)
    h3 = jax.nn.relu(cat @ w3 + b3)
    h4 = h3 @ w4 + b4
    return x + h4.reshape(L, S, D)


if __name__ == "__main__":
    key = jax.random.PRNGKey(0)
    S, D = 8, 32                                             # set_size, z_dim
    keys = jax.random.split(key, 6)

    def linear_params(k, fan_in, fan_out):
        kw, kb = jax.random.split(k)
        bound = 1.0 / float(fan_in) ** 0.5                   # PyTorch-style uniform init
        w = jax.random.uniform(kw, (fan_in, fan_out), jnp.float32, -bound, bound)
        b = jax.random.uniform(kb, (fan_out,), jnp.float32, -bound, bound)
        return w, b

    w1, b1 = linear_params(keys[1], D, 4 * D)
    w2, b2 = linear_params(keys[2], 4 * D, D)
    w3, b3 = linear_params(keys[3], 2 * D, 4 * D)
    w4, b4 = linear_params(keys[4], 4 * D, D)
    params = (w1, b1, w2, b2, w3, b3, w4, b4)

    # Tolerance accounts for bf16 MXU operands (f32 accumulation) vs. the f32 reference.
    TOL = 2e-2

    # Shipped tiny shape: L=2 -> grid=(2,), tl=1 (>= 2 pipelined grid steps).
    x_small = jax.random.normal(keys[0], (2, S, D), jnp.float32)
    out_small = jax.block_until_ready(deepsets_forward(x_small, params))
    ref_small = ref_forward(x_small, params)
    assert out_small.shape == (2, S, D)
    assert jnp.allclose(out_small, ref_small, atol=TOL, rtol=TOL), \
        float(jnp.max(jnp.abs(out_small - ref_small)))

    # Multi-step grid with an even number of steps (exercises tiling + megacore path).
    x_big = jax.random.normal(keys[5], (16, S, D), jnp.float32)
    out_big = jax.block_until_ready(deepsets_forward(x_big, params))
    ref_big = ref_forward(x_big, params)
    assert out_big.shape == (16, S, D)
    assert jnp.allclose(out_big, ref_big, atol=TOL, rtol=TOL), \
        float(jnp.max(jnp.abs(out_big - ref_big)))

    print("KERNEL_OK")
</pallas_src>

<mosaic_0001>
module attributes {stable_mosaic.version = 11 : i64} {
  func.func @deepsets_kernel(%arg0: i32, %arg1: memref<1x8x32xf32, #tpu.memory_space<vmem>>, %arg2: memref<96x128xbf16, #tpu.memory_space<vmem>>, %arg3: memref<256x32xbf16, #tpu.memory_space<vmem>>, %arg4: memref<4x128xf32, #tpu.memory_space<vmem>>, %arg5: memref<1x8x32xf32, #tpu.memory_space<vmem>>) attributes {dimension_semantics = [#tpu.dimension_semantics<parallel>], iteration_bounds = array<i64: 2>, scalar_prefetch = 0 : i64, scratch_operands = 0 : i64, tpu.core_type = #tpu.core_type<tc>, window_params = [{transform_indices = @transform_0, window_bounds = array<i64: 1, 8, 32>}, {pipeline_mode = #tpu.pipeline_mode<synchronous>, transform_indices = @transform_1, window_bounds = array<i64: 96, 128>}, {pipeline_mode = #tpu.pipeline_mode<synchronous>, transform_indices = @transform_2, window_bounds = array<i64: 256, 32>}, {pipeline_mode = #tpu.pipeline_mode<synchronous>, transform_indices = @transform_3, window_bounds = array<i64: 4, 128>}, {transform_indices = @transform_4, window_bounds = array<i64: 1, 8, 32>}]} {
    %c0 = arith.constant 0 : index
    %c0_0 = arith.constant 0 : index
    %c0_1 = arith.constant 0 : index
    %0 = vector.load %arg1[%c0, %c0_0, %c0_1] : memref<1x8x32xf32, #tpu.memory_space<vmem>>, vector<1x8x32xf32>
    %c0_2 = arith.constant 0 : index
    %c0_3 = arith.constant 0 : index
    %1 = vector.load %arg2[%c0_2, %c0_3] : memref<96x128xbf16, #tpu.memory_space<vmem>>, vector<32x128xbf16>
    %c32 = arith.constant 32 : index
    %c0_4 = arith.constant 0 : index
    %2 = vector.load %arg2[%c32, %c0_4] : memref<96x128xbf16, #tpu.memory_space<vmem>>, vector<32x128xbf16>
    %c64 = arith.constant 64 : index
    %c0_5 = arith.constant 0 : index
    %3 = vector.load %arg2[%c64, %c0_5] : memref<96x128xbf16, #tpu.memory_space<vmem>>, vector<32x128xbf16>
    %c0_6 = arith.constant 0 : index
    %c0_7 = arith.constant 0 : index
    %4 = vector.load %arg3[%c0_6, %c0_7] : memref<256x32xbf16, #tpu.memory_space<vmem>>, vector<128x32xbf16>
    %c128 = arith.constant 128 : index
    %c0_8 = arith.constant 0 : index
    %5 = vector.load %arg3[%c128, %c0_8] : memref<256x32xbf16, #tpu.memory_space<vmem>>, vector<128x32xbf16>
    %c0_9 = arith.constant 0 : index
    %c0_10 = arith.constant 0 : index
    %6 = vector.load %arg4[%c0_9, %c0_10] : memref<4x128xf32, #tpu.memory_space<vmem>>, vector<1x128xf32>
    %c1 = arith.constant 1 : index
    %c0_11 = arith.constant 0 : index
    %7 = vector.load %arg4[%c1, %c0_11] : memref<4x128xf32, #tpu.memory_space<vmem>>, vector<1x128xf32>
    %c2 = arith.constant 2 : index
    %c0_12 = arith.constant 0 : index
    %8 = vector.load %arg4[%c2, %c0_12] : memref<4x128xf32, #tpu.memory_space<vmem>>, vector<1x32xf32>
    %c3 = arith.constant 3 : index
    %c0_13 = arith.constant 0 : index
    %9 = vector.load %arg4[%c3, %c0_13] : memref<4x128xf32, #tpu.memory_space<vmem>>, vector<1x32xf32>
    %cst = arith.constant dense<0xFF800000> : vector<1x32xf32>
    %10 = vector.multi_reduction <maximumf>, %0, %cst [1] : vector<1x8x32xf32> to vector<1x32xf32>
    %11 = vector.shape_cast %10 : vector<1x32xf32> to vector<1x1x32xf32>
    %12 = vector.broadcast %11 : vector<1x1x32xf32> to vector<1x8x32xf32>
    %13 = arith.cmpf oeq, %0, %12 : vector<1x8x32xf32>
    %14 = arith.extui %13 : vector<1x8x32xi1> to vector<1x8x32xi32>
    %15 = arith.sitofp %14 : vector<1x8x32xi32> to vector<1x8x32xf32>
    %cst_14 = arith.constant dense<0.000000e+00> : vector<1x32xf32>
    %16 = vector.multi_reduction <add>, %15, %cst_14 [1] : vector<1x8x32xf32> to vector<1x32xf32>
    %17 = vector.shape_cast %16 : vector<1x32xf32> to vector<1x1x32xf32>
    %cst_15 = arith.constant 0xFF800000 : f32
    %18 = vector.broadcast %cst_15 : f32 to vector<1x8x32xf32>
    %19 = arith.select %13, %18, %0 : vector<1x8x32xi1>, vector<1x8x32xf32>
    %cst_16 = arith.constant dense<0xFF800000> : vector<1x32xf32>
    %20 = vector.multi_reduction <maximumf>, %19, %cst_16 [1] : vector<1x8x32xf32> to vector<1x32xf32>
    %21 = vector.shape_cast %20 : vector<1x32xf32> to vector<1x1x32xf32>
    %cst_17 = arith.constant 1.000000e+00 : f32
    %22 = vector.broadcast %cst_17 : f32 to vector<1x1x32xf32>
    %23 = arith.cmpf oeq, %17, %22 : vector<1x1x32xf32>
    %24 = vector.broadcast %23 : vector<1x1x32xi1> to vector<1x8x32xi1>
    %25 = arith.andi %13, %24 : vector<1x8x32xi1>
    %26 = vector.shape_cast %21 : vector<1x1x32xf32> to vector<1x1x32xf32>
    %27 = vector.broadcast %26 : vector<1x1x32xf32> to vector<1x8x32xf32>
    %28 = vector.shape_cast %11 : vector<1x1x32xf32> to vector<1x1x32xf32>
    %29 = vector.broadcast %28 : vector<1x1x32xf32> to vector<1x8x32xf32>
    %30 = arith.select %25, %27, %29 : vector<1x8x32xi1>, vector<1x8x32xf32>
    %cst_18 = arith.constant 0.000000e+00 : f32
    %31 = vector.broadcast %cst_18 : f32 to vector<1x8x32xf32>
    %32 = arith.maximumf %30, %31 : vector<1x8x32xf32>
    %33 = vector.shape_cast %0 : vector<1x8x32xf32> to vector<8x32xf32>
    %34 = vector.shape_cast %32 : vector<1x8x32xf32> to vector<8x32xf32>
    %35 = arith.truncf %34 : vector<8x32xf32> to vector<8x32xbf16>
    %cst_19 = arith.constant dense<0.000000e+00> : vector<8x128xf32>
    %36 = tpu.matmul %35, %1, %cst_19 {dimension_numbers = #tpu.dot_dimension_numbers<[1], [0], [0], [1], [0, 0, 1, 1], [], []>} : vector<8x32xbf16>, vector<32x128xbf16>, vector<8x128xf32> -> vector<8x128xf32>
    %37 = vector.broadcast %6 : vector<1x128xf32> to vector<8x128xf32>
    %38 = arith.addf %36, %37 : vector<8x128xf32>
    %cst_20 = arith.constant 0.000000e+00 : f32
    %39 = vector.broadcast %cst_20 : f32 to vector<8x128xf32>
    %40 = arith.maximumf %38, %39 : vector<8x128xf32>
    %41 = arith.truncf %40 : vector<8x128xf32> to vector<8x128xbf16>
    %cst_21 = arith.constant dense<0.000000e+00> : vector<8x32xf32>
    %42 = tpu.matmul %41, %4, %cst_21 {dimension_numbers = #tpu.dot_dimension_numbers<[1], [0], [0], [1], [0, 0, 1, 1], [], []>} : vector<8x128xbf16>, vector<128x32xbf16>, vector<8x32xf32> -> vector<8x32xf32>
    %43 = vector.broadcast %8 : vector<1x32xf32> to vector<8x32xf32>
    %44 = arith.addf %42, %43 : vector<8x32xf32>
    %45 = arith.truncf %33 : vector<8x32xf32> to vector<8x32xbf16>
    %cst_22 = arith.constant dense<0.000000e+00> : vector<8x128xf32>
    %46 = tpu.matmul %45, %2, %cst_22 {dimension_numbers = #tpu.dot_dimension_numbers<[1], [0], [0], [1], [0, 0, 1, 1], [], []>} : vector<8x32xbf16>, vector<32x128xbf16>, vector<8x128xf32> -> vector<8x128xf32>
    %47 = arith.truncf %44 : vector<8x32xf32> to vector<8x32xbf16>
    %cst_23 = arith.constant dense<0.000000e+00> : vector<8x128xf32>
    %48 = tpu.matmul %47, %3, %cst_23 {dimension_numbers = #tpu.dot_dimension_numbers<[1], [0], [0], [1], [0, 0, 1, 1], [], []>} : vector<8x32xbf16>, vector<32x128xbf16>, vector<8x128xf32> -> vector<8x128xf32>
    %49 = arith.addf %46, %48 : vector<8x128xf32>
    %50 = vector.broadcast %7 : vector<1x128xf32> to vector<8x128xf32>
    %51 = arith.addf %49, %50 : vector<8x128xf32>
    %cst_24 = arith.constant 0.000000e+00 : f32
    %52 = vector.broadcast %cst_24 : f32 to vector<8x128xf32>
    %53 = arith.maximumf %51, %52 : vector<8x128xf32>
    %54 = arith.truncf %53 : vector<8x128xf32> to vector<8x128xbf16>
    %cst_25 = arith.constant dense<0.000000e+00> : vector<8x32xf32>
    %55 = tpu.matmul %54, %5, %cst_25 {dimension_numbers = #tpu.dot_dimension_numbers<[1], [0], [0], [1], [0, 0, 1, 1], [], []>} : vector<8x128xbf16>, vector<128x32xbf16>, vector<8x32xf32> -> vector<8x32xf32>
    %56 = vector.broadcast %9 : vector<1x32xf32> to vector<8x32xf32>
    %57 = arith.addf %55, %56 : vector<8x32xf32>
    %58 = arith.addf %33, %57 : vector<8x32xf32>
    %59 = vector.shape_cast %58 : vector<8x32xf32> to vector<1x8x32xf32>
    %c0_26 = arith.constant 0 : index
    %c0_27 = arith.constant 0 : index
    %c0_28 = arith.constant 0 : index
    %60 = vector.load %arg5[%c0_26, %c0_27, %c0_28] : memref<1x8x32xf32, #tpu.memory_space<vmem>>, vector<1x8x32xf32>
    tpu.vector_store %arg5[%c0_26, %c0_27, %c0_28], %59 {strides = array<i32>} : memref<1x8x32xf32, #tpu.memory_space<vmem>>, vector<1x8x32xf32>,
    return
  }
  func.func @transform_0(%arg0: i32) -> (i32, i32, i32) {
    %c0_i32 = arith.constant 0 : i32
    %c0_i32_0 = arith.constant 0 : i32
    %c0_i32_1 = arith.constant 0 : i32
    return %arg0, %c0_i32, %c0_i32_0 : i32, i32, i32
  }
  func.func @transform_1(%arg0: i32) -> (i32, i32) {
    %c0_i32 = arith.constant 0 : i32
    %c0_i32_0 = arith.constant 0 : i32
    %c0_i32_1 = arith.constant 0 : i32
    return %c0_i32, %c0_i32_0 : i32, i32
  }
  func.func @transform_2(%arg0: i32) -> (i32, i32) {
    %c0_i32 = arith.constant 0 : i32
    %c0_i32_0 = arith.constant 0 : i32
    %c0_i32_1 = arith.constant 0 : i32
    return %c0_i32, %c0_i32_0 : i32, i32
  }
  func.func @transform_3(%arg0: i32) -> (i32, i32) {
    %c0_i32 = arith.constant 0 : i32
    %c0_i32_0 = arith.constant 0 : i32
    %c0_i32_1 = arith.constant 0 : i32
    return %c0_i32, %c0_i32_0 : i32, i32
  }
  func.func @transform_4(%arg0: i32) -> (i32, i32, i32) {
    %c0_i32 = arith.constant 0 : i32
    %c0_i32_0 = arith.constant 0 : i32
    %c0_i32_1 = arith.constant 0 : i32
    return %arg0, %c0_i32, %c0_i32_0 : i32, i32, i32
  }
}

</mosaic_0001>

<bundles_post_ra>
// kernel: tpu_custom_call.1
= control target key start
LH: loop header
LB: loop body
LE: loop exit
PB: predicated region body
PF: predicated region fallthrough
CT: control target
= control target key end

     0   :  { %9 = vsyncpa [#allocation3], 0  ;;  %s1233_s0 = inlined_call_operand.vmem [shape: f32[2,8,32], index: 0, kind: input, shape index: {}]   ;;  %s1234_s1 = inlined_call_operand.vmem [shape: bf16[96,128], index: 1, kind: input, shape index: {}]   ;;  %s1235_s2 = inlined_call_operand.vmem [shape: bf16[256,32], index: 2, kind: input, shape index: {}]   ;;  %s1236_s3 = inlined_call_operand.vmem [shape: f32[4,128], index: 3, kind: input, shape index: {}]   ;;  %s1237_s4 = inlined_call_operand.hbm [shape: f32[2,8,32], index: 4, kind: output, shape index: {}]  }
   0x1   :  { %11 = vsyncpa [#allocation3 + $0x1], 0  ;;  %s1001_s15 = smov 0   ;;  %s1003_s16 = smov 0  }
   0x2   :  { %s1005_s17 = smov 0   ;;  %s1007_s18 = smov 0  }
   0x3 LB: > { %s1022_s19 = sadd.s32 4294967295, %s971_s18   ;;  %s715_s20 = sadd.s32 4294967294, %s971_s18   ;;  %s971_s18 = sphi %s1007_s18, %s1243_s18   ;;  %s967_s17 = sphi %s1005_s17, %s1242_s17   ;;  %s963_s16 = sphi %s1003_s16, %s1241_s16   ;;  %s959_s15 = sphi %s1001_s15, %s1240_s15  }
   0x4   : > { %s1026_s21 = sadd.s32 1, %s971_s18   ;;  %s113_s22 = sadd.s32 1, %s967_s17 }
   0x5   : > { %s110_s23 = ssub.s32 %s971_s18, %s1026_s21  ;;  %p123_p0 = scmp.ne.s32.totalorder %s967_s17, %s963_s16 }
   0x6   : > { %p111_p1 = scmp.eq.s32.totalorder %s110_s23, 0  ;;  %p124_p2 = scmp.eq.s32.totalorder %s1022_s19, 1 }
   0x7   : > { %p129_p3 = scmp.ne.s32.totalorder %s963_s16, %s959_s15  ;;  %p130_p4 = scmp.eq.s32.totalorder %s715_s20, 1 }
   0x8   : > { %s1037_s24 = scalar_select %p111_p1, %s967_s17, %s113_s22  }
   0x9   : > { %p1039_p5 = por %p124_p2, %p123_p0  ;;  %p1043_p6 = por %p130_p4, %p129_p3 }
   0xa   : > { %p718_p7 = scmp.ge.s32.totalorder %s971_s18, 1  ;;  %p164_p8 = scmp.lt.s32.totalorder %s971_s18, 3 }
   0xc   : > { %p165_p9 = pnand %p718_p7, %p164_p8 }
   0xd   : > { %v887_v0 = vld [vmem:[%s1234_s1] sm:$0xff] (!%p165_p9)   ;;  %v973_v1 = vmov (!%p165_p9), 0.0   ;;  %v888_v2 = vld [vmem:[%s1234_s1 + $0x8] sm:$0xff] (!%p165_p9)   ;;  %vm974_vm0 = vmmov (!%p165_p9), 0   ;;  %p189_p10 = scmp.lt.s32.totalorder (!%p165_p9), %s1022_s19, 1  ;;  %vm243_vm1 = vcmask (!%p165_p9), 261120  }
   0xe   : > { %168 = sbr.rel (%p165_p9) target bundleno = 953 (0x3b9), region = 36  ;;  %782 = vmatprep.subr.bf16.mxu1 (!%p165_p9), %v973_v1  ;;  %810 = vmatprep.subr.bf16.mxu0 (!%p165_p9), %v973_v1  ;;  %v889_v29 = vld [vmem:[%s1235_s2] sm:$0xff] (!%p165_p9)   ;;  %v890_v31 = vld [vmem:[%s1235_s2 + $0x8] sm:$0xff] (!%p165_p9)   ;;  %v891_v32 = vld [vmem:[%s1235_s2 + $0x10] sm:$0xff] (!%p165_p9)   ;;  %s975_s22 = smov (!%p165_p9), [#allocation2]  }
   0xf   : > { %783 = vmatpush3.bf16.msra.mxu1 (!%p165_p9), %v887_v0  ;;  %786 = vmatprep.mubr.msk.bf16.mxu1 (!%p165_p9), %vm974_vm0, %v973_v1  ;;  %v892_v33 = vld [vmem:[%s1235_s2 + $0x18] sm:$0xff] (!%p165_p9)   ;;  %v893_v34 = vld [vmem:[%s1235_s2 + $0x20] sm:$0xff] (!%p165_p9)   ;;  %v894_v35 = vld [vmem:[%s1235_s2 + $0x28] sm:$0xff] (!%p165_p9)   ;;  %s913_s23 = sshll.u32 (!%p165_p9), %s975_s22, 4  ;;  %s914_s23 = int_to_ptr.vmem [resolvable:$false] %s913_s23 }
  0x10   : > { %784 = vmatprep.subr.bf16.mxu1 (!%p165_p9), %v973_v1  ;;  %814 = vmatprep.mubr.msk.bf16.mxu0 (!%p165_p9), %vm974_vm0, %v973_v1  ;;  %v895_v36 = vld [vmem:[%s1235_s2 + $0x30] sm:$0xff] (!%p165_p9)   ;;  %v896_v37 = vld [vmem:[%s1235_s2 + $0x38] sm:$0xff] (!%p165_p9)   ;;  %v897_v38 = vld [vmem:[%s1234_s1 + $0x20] sm:$0xff] (!%p165_p9)   ;;  %s915_s27 = scalar_lea.vmem (!%p165_p9), %s914_s23, 256 }
  0x11   : > { %811 = vmatpush3.bf16.msra.mxu0 (!%p165_p9), %v897_v38  ;;  %v722_v39 = vld [vmem:[%s1236_s3] ss:$0 sm:$0xff] (!%p165_p9)  ;;  %v898_v47 = vld [vmem:[%s1234_s1 + $0x28] sm:$0xff] (!%p165_p9)   ;;  %v726_v48 = vld [vmem:[%s1236_s3 + $0x2] ss:$0 sm:$0xff] (!%p165_p9) }
  0x12   : > { %812 = vmatprep.subr.bf16.mxu0 (!%p165_p9), %v973_v1  ;;  %v899_v53 = vld [vmem:[%s1234_s1 + $0x10] sm:$0xff] (!%p165_p9)   ;;  %v900_v56 = vld [vmem:[%s1234_s1 + $0x18] sm:$0xff] (!%p165_p9)   ;;  %v901_v58 = vld [vmem:[%s1235_s2 + $0x40] sm:$0xff] (!%p165_p9)  }
  0x13   : > { %785 = vmatpush3.bf16.msra.mxu1 (!%p165_p9), %v888_v2  ;;  %v902_v59 = vld [vmem:[%s1235_s2 + $0x48] sm:$0xff] (!%p165_p9)   ;;  %v903_v60 = vld [vmem:[%s1235_s2 + $0x50] sm:$0xff] (!%p165_p9)   ;;  %v904_v61 = vld [vmem:[%s1235_s2 + $0x58] sm:$0xff] (!%p165_p9)  }
  0x14   : > { %790 = vmatprep.subr.bf16.mxu1 (!%p165_p9), %v973_v1  ;;  %v905_v62 = vld [vmem:[%s1235_s2 + $0x60] sm:$0xff] (!%p165_p9)   ;;  %v906_v63 = vld [vmem:[%s1235_s2 + $0x68] sm:$0xff] (!%p165_p9)   ;;  %v907_v0 = vld [vmem:[%s1235_s2 + $0x70] sm:$0xff] (!%p165_p9)  }
  0x15   : > { %s190_s5 = scalar_select %p189_p10, %s1022_s19, 1  ;;  %813 = vmatpush3.bf16.msra.mxu0 %v898_v47  ;;  %v908_v2 = vld [vmem:[%s1235_s2 + $0x78] sm:$0xff]  }
  0x16   : > { %818 = vmatprep.subr.bf16.mxu0 %v973_v1 }
  0x17   : > { %s720_s6 = sshll.u32 %s190_s5, 3  ;;  %s186_s5 = sand.u32 1, %s963_s16  }
  0x18   : > { %s192_s9 = scalar_lea.vmem %s1233_s0, %s720_s6  ;;  %s719_s6 = sshll.u32 %s186_s5, 3 }
  0x19   : > { %v1068_v3 = vld [vmem:[%s192_s9] sm:$0xff]  ;;  %s752_s9 = sshll.u32 %s1022_s19, 7  ;;  %s188_s10 = scalar_lea.vmem [#allocation2], %s719_s6 }
  0x1a   : > { %v244_v4 = vsel %vm243_vm1, %v1068_v3, -inf  ;;  %v429_v57 = vpack.c.bf16 %v1068_v3, %v1068_v3  ;;  %s656_s11 = sshll.u32 %s188_s10, 4  ;;  %s1190_s14 = scalar_lea.hbm %s1237_s4, %s752_s9  ;;  %s1192_s11 = int_to_ptr.vmem [resolvable:$true] %s656_s11 }
  0x1b   : > { %v245_v5 = vrot.slane %v244_v4, 4  ;;  %s643_s19 = scalar_lea.sflag [#allocation3], %s186_s5  ;;  %s909_s20 = scalar_lea.vmem %s1192_s11, 128 }
  0x1c   : > { %p910_p11 = scmp.ne.s32.totalorder %s1192_s11, %s909_s20  ;;  %p916_p0 = scmp.lt.s32.totalorder %s1192_s11, %s914_s23 }
  0x1d   : > { %v246_v6 = vmax.f32 %v244_v4, %v245_v5  ;;  %p917_p1 = scmp.lt.s32.totalorder %s915_s27, %s909_s20 }
  0x1e   : > { %p911_p12 = pnand %p910_p11, %p1039_p5 }
  0x1f   : > { %v247_v7 = vrot.slane %v246_v6, 2  ;;  %p918_p2 = por %p917_p1, %p916_p0 }
  0x20   : > { %p912_p13 = pneg %p911_p12 }
  0x21   : > { %v248_v8 = vmax.f32 %v246_v6, %v247_v7 }
  0x22   : > { %p919_p3 = pnand %p918_p2, %p912_p13 }
  0x23   : > { %v249_v9 = vrot.slane %v248_v8, 1 }
  0x25   : > { %v250_v10 = vmax.f32 %v248_v8, %v249_v9  ;;  %v741_v8 = vld [vmem:[%s1236_s3 + $0x1] ss:$0 sm:$0xff] }
  0x27   : > { %vm251_vm2 = vcmp.eq.f32.partialorder %v1068_v3, %v250_v10 }
  0x28   : > { %v721_v11 = vsel %vm251_vm2, 1.0, %v973_v1  ;;  %v261_v12 = vsel %vm251_vm2, -inf, %v1068_v3 }
  0x29   : > { %v254_v13 = vsel %vm243_vm1, %v721_v11, 0.0  ;;  %v262_v14 = vsel %vm243_vm1, %v261_v12, -inf }
  0x2a   : > { %v255_v15 = vrot.slane %v254_v13, 4  ;;  %v263_v16 = vrot.slane %v262_v14, 4 }
  0x2c   : > { %v256_v17 = vadd.f32 %v255_v15, %v254_v13  ;;  %v264_v18 = vmax.f32 %v262_v14, %v263_v16  ;;  %v742_v16 = vld [vmem:[%s1236_s3 + $0x3] ss:$0 sm:$0xff] }
  0x2e   : > { %v257_v19 = vrot.slane %v256_v17, 2  ;;  %v265_v20 = vrot.slane %v264_v18, 2 }
  0x30   : > { %v258_v21 = vadd.f32 %v257_v19, %v256_v17  ;;  %v266_v22 = vmax.f32 %v264_v18, %v265_v20 }
  0x32   : > { %v259_v23 = vrot.slane %v258_v21, 1  ;;  %v267_v24 = vrot.slane %v266_v22, 1 }
  0x34   : > { %v260_v25 = vadd.f32 %v259_v23, %v258_v21  ;;  %v268_v26 = vmax.f32 %v266_v22, %v267_v24 }
  0x36   : > { %vm269_vm3 = vcmp.eq.f32.partialorder %v260_v25, 1.0 }
  0x37   : > { %vm272_vm4 = vmand %vm251_vm2, %vm269_vm3 }
  0x38   : > { %v273_v27 = vsel %vm272_vm4, %v268_v26, %v250_v10 }
  0x39   : > { %v274_v28 = vmax.f32 %v273_v27, 0.0 }
  0x3b   : > { %v275_v30 = vpack.c.bf16 %v274_v28, %v274_v28 }
  0x3d   : > { %787 = vmatmul.mubr.msk.bf16.vlgmr.msra.gmra.mrb[0].mxu1 %vm243_vm1, %v275_v30 }
  0x3e   : > { %791 = vmatpush3.bf16.msra.mxu1 %v889_v29  ;;  %806 = vmatprep.mubr.msk.bf16.mxu1 %vm974_vm0, %v973_v1 }
  0x3f   : > { %792 = vmatprep.subr.bf16.mxu1 %v973_v1 }
  0x42   : > { %793 = vmatpush3.bf16.msra.mxu1 %v890_v31 }
  0x43   : > { %794 = vmatprep.subr.bf16.mxu1 %v973_v1 }
  0x46   : > { %795 = vmatpush3.bf16.msra.mxu1 %v891_v32 }
  0x47   : > { %796 = vmatprep.subr.bf16.mxu1 %v973_v1 }
  0x4a   : > { %797 = vmatpush3.bf16.msra.mxu1 %v892_v33 }
  0x4b   : > { %798 = vmatprep.subr.bf16.mxu1 %v973_v1 }
  0x4e   : > { %799 = vmatpush3.bf16.msra.mxu1 %v893_v34 }
  0x4f   : > { %800 = vmatprep.subr.bf16.mxu1 %v973_v1 }
  0x52   : > { %801 = vmatpush3.bf16.msra.mxu1 %v894_v35 }
  0x53   : > { %802 = vmatprep.subr.bf16.mxu1 %v973_v1 }
  0x56   : > { %803 = vmatpush3.bf16.msra.mxu1 %v895_v36 }
  0x57   : > { %804 = vmatprep.subr.bf16.mxu1 %v973_v1 }
  0x5a   : > { %805 = vmatpush3.bf16.msra.mxu1 %v896_v37 }
 0x110   : > { %v329_v40 = vpop.f32.mrb[0].mxu1 }
 0x111   : > { %v330_v41 = vadd.f32 %v722_v39, %v329_v40  ;;  %v788_v42 = vpop.f32.mrb[1].mxu1 }
 0x112   : > { %v332_v43 = vpop.f32.mrb[2].mxu1 }
 0x113   : > { %v335_v44 = vmax.f32 %v330_v41, 0.0  ;;  %v789_v45 = vpop.f32.mrb[3].mxu1 }
 0x115   : > { %v336_v46 = vpack.c.bf16 %v335_v44, %v335_v44 }
 0x117   : > { %807 = vmatmul.mubr.bf16.vlgmr.msra.gmra.mrb[4].mxu1 %v336_v46 }
 0x1ea   : > { %v423_v49 = vpop.f32.mrb[4].mxu1 }
 0x1eb   : > { %v424_v50 = vadd.f32 %v726_v48, %v423_v49  ;;  %v808_v51 = vpop.f32.mrb[5].mxu1 }
 0x1ec   : > { %v426_v52 = vpop.f32.mrb[6].mxu1 }
 0x1ed   : > { %v430_v54 = vpack.c.bf16 %v424_v50, %v424_v50  ;;  %v809_v55 = vpop.f32.mrb[7].mxu1 }
 0x1ef   : > { %815 = vmatmul.mubr.msk.bf16.vlgmr.msra.gmra.mrb[0].mxu0 %vm243_vm1, %v430_v54 }
 0x1f0   : > { %819 = vmatpush3.bf16.msra.mxu0 %v899_v53  ;;  %822 = vmatprep.mubr.msk.bf16.mxu0 %vm974_vm0, %v973_v1 }
 0x1f1   : > { %820 = vmatprep.subr.bf16.mxu0 %v973_v1 }
 0x1f4   : > { %821 = vmatpush3.bf16.msra.mxu0 %v900_v56 }
 0x1f5   : > { %826 = vmatprep.subr.bf16.mxu0 %v973_v1 }
 0x1f7   : > { %823 = vmatmul.mubr.msk.bf16.vlgmr.msra.gmra.mrb[4].mxu0 %vm243_vm1, %v429_v57 }
 0x1f8   : > { %827 = vmatpush3.bf16.msra.mxu0 %v901_v58  ;;  %842 = vmatprep.mubr.msk.bf16.mxu0 %vm974_vm0, %v973_v1 }
 0x1f9   : > { %828 = vmatprep.subr.bf16.mxu0 %v973_v1 }
 0x1fc   : > { %829 = vmatpush3.bf16.msra.mxu0 %v902_v59 }
 0x1fd   : > { %830 = vmatprep.subr.bf16.mxu0 %v973_v1 }
 0x200   : > { %831 = vmatpush3.bf16.msra.mxu0 %v903_v60 }
 0x201   : > { %832 = vmatprep.subr.bf16.mxu0 %v973_v1 }
 0x204   : > { %833 = vmatpush3.bf16.msra.mxu0 %v904_v61 }
 0x205   : > { %834 = vmatprep.subr.bf16.mxu0 %v973_v1 }
 0x208   : > { %835 = vmatpush3.bf16.msra.mxu0 %v905_v62 }
 0x209   : > { %836 = vmatprep.subr.bf16.mxu0 %v973_v1 }
 0x20c   : > { %837 = vmatpush3.bf16.msra.mxu0 %v906_v63 }
 0x20d   : > { %838 = vmatprep.subr.bf16.mxu0 %v973_v1 }
 0x210   : > { %839 = vmatpush3.bf16.msra.mxu0 %v907_v0 }
 0x211   : > { %840 = vmatprep.subr.bf16.mxu0 %v973_v1 }
 0x214   : > { %841 = vmatpush3.bf16.msra.mxu0 %v908_v2 }
 0x2c2   : > { %v480_v4 = vpop.f32.mrb[0].mxu0 }
 0x2c3   : > { %v816_v5 = vpop.f32.mrb[1].mxu0 }
 0x2c4   : > { %v483_v6 = vpop.f32.mrb[2].mxu0 }
 0x2c5   : > { %v817_v7 = vpop.f32.mrb[3].mxu0 }
 0x2ca   : > { %v535_v9 = vpop.f32.mrb[4].mxu0 }
 0x2cb   : > { %v536_v10 = vadd.f32 %v535_v9, %v480_v4  ;;  %v824_v11 = vpop.f32.mrb[5].mxu0 }
 0x2cc   : > { %v538_v12 = vpop.f32.mrb[6].mxu0 }
 0x2cd   : > { %v545_v1 = vadd.f32 %v741_v8, %v536_v10  ;;  %v825_v13 = vpop.f32.mrb[7].mxu0 }
 0x2cf   : > { %v546_v14 = vmax.f32 %v545_v1, 0.0 }
 0x2d1   : > { %v547_v15 = vpack.c.bf16 %v546_v14, %v546_v14 }
 0x2d3   : > { %843 = vmatmul.mubr.bf16.vlgmr.msra.gmra.mrb[8].mxu0 %v547_v15 }
 0x3a6   : > { %v634_v17 = vpop.f32.mrb[8].mxu0 }
 0x3a7   : > { %v635_v18 = vadd.f32 %v742_v16, %v634_v17  ;;  %v844_v19 = vpop.f32.mrb[9].mxu0 }
 0x3a8   : > { %v637_v20 = vpop.f32.mrb[10].mxu0 }
 0x3a9   : > { %v640_v21 = vadd.f32 %v635_v18, %v1068_v3  ;;  %v845_v22 = vpop.f32.mrb[11].mxu0 }
 0x3ab   : > { %641 = vst.msk [vmem:[%s188_s10] sm:$0xff] %vm243_vm1, %v640_v21 }
 0x3ac   : > { %922 = shalt.err (!%p919_p3)
}
 0x3ad   : > { %s923_s28 = scalar_lea.hbm %s1190_s14, 128  ;;  %s927_s5 = scalar_lea.hbm %s1237_s4, 256 }
 0x3ae   : > { %p924_p4 = scmp.ne.s32.totalorder %s1190_s14, %s923_s28  ;;  %p928_p9 = scmp.lt.u32.totalorder %s1190_s14, %s1237_s4 }
 0x3af   : > { %p929_p10 = scmp.lt.u32.totalorder %s927_s5, %s923_s28  ;;  %p931_p12 = scmp.lt.u32.totalorder %s923_s28, %s1190_s14 }
 0x3b0   : > { %p925_p7 = pnand %p924_p4, %p1039_p5 }
 0x3b1   : > { %p930_p11 = por %p929_p10, %p928_p9 }
 0x3b2   : > { %p926_p8 = pneg %p925_p7 }
 0x3b3   : > { %p932_p13 = por %p931_p12, %p930_p11 }
 0x3b5   : > { %p933_p0 = pnand %p932_p13, %p926_p8 }
 0x3b7   : > { %936 = shalt.err (!%p933_p0)
}
 0x3b8   : > { %846 = dma.vmem_to_hbm [thread:$0]  (%p1039_p5), %s1192_s11, 128, %s1190_s14, %s643_s19  }
 0x3b9 PF: > { %p852_p1 = scmp.ge.s32.totalorder %s971_s18, 2  ;;  %s668_s8 = sand.u32 1, %s959_s15  }
 0x3ba   : > { %s669_s9 = scalar_lea.sflag [#allocation3], %s668_s8 }
 0x3bb   : > { %p849_p2 = pnand %p852_p1, %p1043_p6 }
 0x3bd   : > { %954 = dma.done.wait (!%p849_p2), %s669_s9, 128  }
 0x3be   : > { %956 = vsyncadd (!%p849_p2), %s669_s9, 4294967168  ;;  %p14_p3 = scmp.ge.s32.totalorder %s1026_s21, 4   ;;  %s1240_s15 = smov %s963_s16 }
 0x3bf   : > { %s1241_s16 = smov %s967_s17  ;;  %s1242_s17 = smov %s1037_s24 }
 0x3c0   : > { %s1243_s18 = smov %s1026_s21  ;;  %16 = sbr.rel (!%p14_p3) target bundleno = 3 (0x3), region = 71 }
 0x3c7   :  { %674 = vsyncpa [#allocation3], 1 }
 0x3c8   :  { %676 = vsyncpa [#allocation3 + $0x1], 1 }

</bundles_post_ra>
